<compile_context>
chip_gen: v6e
topology: v6e:2x2x1
jax: 0.10.0
libtpu: 0.0.40
codegen_flags: <defaults>
</compile_context>

<pallas_src>
import functools

import jax
import jax.numpy as jnp
from jax.experimental import pallas as pl
from jax.experimental.pallas import tpu as pltpu  # noqa: F401  (kept for TPU-specific tuning hooks)


# ----------------------------- Pallas kernel ---------------------------------

def _make_fused_kernel(B, T, H):
    """Fused tokenizer-MLP + LSTM forward. Gate order matches PyTorch: [i, f, g, o]."""

    def kernel(x_ref, w1_ref, b1_ref, wc_ref, bc_ref, wh_ref,
               y_ref, hN_ref, cN_ref):
        # ---- tokenizer layer 1 + folded (layer 2 o LSTM input projection), hoisted
        h1 = jnp.tanh(
            jnp.dot(x_ref[...], w1_ref[...], preferred_element_type=jnp.float32)
            + b1_ref[...]
        )                                                          # (B*T, H1)
        gx = (
            jnp.dot(h1, wc_ref[...], preferred_element_type=jnp.float32)
            + bc_ref[...]
        )                                                          # (B*T, 4H), batch-major rows

        wh = wh_ref[...]                                           # (H, 4H)
        h = jnp.zeros((B, H), jnp.float32)
        c = jnp.zeros((B, H), jnp.float32)

        ys = []
        for t in range(T):  # fully static unrolled recurrence (T is small)
            # rows (b*T + t) for b in [0, B) -> (B, 4H); static slices, independent of h/c
            gx_t = jnp.concatenate(
                [gx[b * T + t: b * T + t + 1, :] for b in range(B)], axis=0
            )
            gates = gx_t + jnp.dot(h, wh, preferred_element_type=jnp.float32)  # (B, 4H)

            sg = jax.nn.sigmoid(gates)        # one EUP pass over the full gate vreg
            i = sg[:, 0 * H:1 * H]
            f = sg[:, 1 * H:2 * H]
            o = sg[:, 3 * H:4 * H]
            g = jnp.tanh(gates[:, 2 * H:3 * H])

            c = f * c + i * g
            h = o * jnp.tanh(c)
            ys.append(h)

        # single lane-dense writeback: (B, T*H), last dim = T*H (multiple of 128)
        y_ref[...] = jnp.concatenate(ys, axis=-1).astype(y_ref.dtype)
        hN_ref[...] = h.astype(hN_ref.dtype)
        cN_ref[...] = c.astype(cN_ref.dtype)

    return kernel


# ------------------------------ Wrappers --------------------------------------

def prepare_params(w1, b1, w2, b2, w_ih, w_hh, b_ih, b_hh):
    """One-time algebraic folding / pre-transposition (off the per-call path).

    PyTorch layouts in:  w1 (H1, Din), w2 (Dtok, H1), w_ih (4H, Dtok), w_hh (4H, H).
    """
    w1t = w1.T                                        # (Din, H1)
    b1r = b1[None, :]                                 # (1, H1)
    wct = (w_ih @ w2).T                               # (H1, 4H)   W_comb^T
    bcr = (w_ih @ b2 + b_ih + b_hh)[None, :]          # (1, 4H)    combined bias
    wht = w_hh.T                                      # (H, 4H)
    return (w1t, b1r, wct, bcr, wht)


@jax.jit
def lstm_encoder_forward(x, prepped):
    """Equivalent of TorchLSTMEncoder.forward(x, state=None).

    x: (B, T, input_dim) float32.
    Returns (y, (h_n, c_n)) with y: (B, T, H), h_n/c_n: (1, B, H).
    """
    # TODO(synk): external (h0, c0) `state` input not plumbed; only the state=None path.
    w1t, b1r, wct, bcr, wht = prepped
    B, T, Din = x.shape
    H = wht.shape[0]

    kernel = _make_fused_kernel(B, T, H)
    y2d, hN, cN = pl.pallas_call(
        kernel,
        out_shape=(
            jax.ShapeDtypeStruct((B, T * H), jnp.float32),   # lane-dense y
            jax.ShapeDtypeStruct((B, H), jnp.float32),       # h_n
            jax.ShapeDtypeStruct((B, H), jnp.float32),       # c_n
        ),
    )(x.reshape(B * T, Din), w1t, b1r, wct, bcr, wht)

    y = y2d.reshape(B, T, H)                                 # free row-major reshape
    return y, (hN[None, ...], cN[None, ...])


# ------------------------------ Reference --------------------------------------

def ref_forward(x, params):
    (w1, b1, w2, b2, w_ih, w_hh, b_ih, b_hh) = params
    B, T, Din = x.shape
    H = w_hh.shape[1]

    h1 = jnp.tanh(x.reshape(B * T, Din) @ w1.T + b1)
    tok = (h1 @ w2.T + b2).reshape(B, T, -1)

    def step(carry, x_t):
        h, c = carry
        gates = x_t @ w_ih.T + b_ih + h @ w_hh.T + b_hh
        i, f, g, o = jnp.split(gates, 4, axis=-1)
        i = jax.nn.sigmoid(i)
        f = jax.nn.sigmoid(f)
        g = jnp.tanh(g)
        o = jax.nn.sigmoid(o)
        c = f * c + i * g
        h = o * jnp.tanh(c)
        return (h, c), h

    init = (jnp.zeros((B, H), jnp.float32), jnp.zeros((B, H), jnp.float32))
    (hN, cN), ys = jax.lax.scan(step, init, tok.transpose(1, 0, 2))
    return ys.transpose(1, 0, 2), (hN[None], cN[None])


# --------------------------------- Main ----------------------------------------

if __name__ == "__main__":
    # module config: TorchLSTMEncoder(input_dim=16, mlp_layers=[32, 16], lstm_hidden_size=32)
    B, T = 2, 8
    INPUT_DIM = 16
    MLP_LAYERS = [32, 16]       # tokenizer: Linear(16,32) -> Tanh -> Linear(32,16)
    HIDDEN = 32                 # LSTM hidden size

    key = jax.random.PRNGKey(0)
    keys = jax.random.split(key, 10)

    def u(k, shape, fan_in):
        bound = 1.0 / jnp.sqrt(jnp.float32(fan_in))
        return jax.random.uniform(k, shape, jnp.float32, -bound, bound)

    # tokenizer MLP params (PyTorch Linear layout: (out, in))
    w1 = u(keys[0], (MLP_LAYERS[0], INPUT_DIM), INPUT_DIM)
    b1 = u(keys[1], (MLP_LAYERS[0],), INPUT_DIM)
    w2 = u(keys[2], (MLP_LAYERS[1], MLP_LAYERS[0]), MLP_LAYERS[0])
    b2 = u(keys[3], (MLP_LAYERS[1],), MLP_LAYERS[0])

    # LSTM params (PyTorch layout: weight_ih (4H, D), weight_hh (4H, H), gate order i,f,g,o)
    w_ih = u(keys[4], (4 * HIDDEN, MLP_LAYERS[1]), HIDDEN)
    w_hh = u(keys[5], (4 * HIDDEN, HIDDEN), HIDDEN)
    b_ih = u(keys[6], (4 * HIDDEN,), HIDDEN)
    b_hh = u(keys[7], (4 * HIDDEN,), HIDDEN)

    params = (w1, b1, w2, b2, w_ih, w_hh, b_ih, b_hh)
    prepped = prepare_params(*params)     # one-time folding, off the per-call path

    x = jax.random.normal(keys[8], (B, T, INPUT_DIM), jnp.float32)

    y, (h_n, c_n) = lstm_encoder_forward(x, prepped)
    jax.block_until_ready((y, h_n, c_n))

    y_ref, (h_ref, c_ref) = ref_forward(x, params)

    assert y.shape == (B, T, HIDDEN)
    assert h_n.shape == (1, B, HIDDEN) and c_n.shape == (1, B, HIDDEN)
    assert jnp.allclose(y, y_ref, atol=1e-4, rtol=1e-4)
    assert jnp.allclose(h_n, h_ref, atol=1e-4, rtol=1e-4)
    assert jnp.allclose(c_n, c_ref, atol=1e-4, rtol=1e-4)

    print("KERNEL_OK")
</pallas_src>

<mosaic_0001>
module attributes {stable_mosaic.version = 11 : i64} {
  func.func @kernel(%arg0: memref<16x16xf32, #tpu.memory_space<vmem>>, %arg1: memref<16x32xf32, #tpu.memory_space<vmem>>, %arg2: memref<1x32xf32, #tpu.memory_space<vmem>>, %arg3: memref<32x128xf32, #tpu.memory_space<vmem>>, %arg4: memref<1x128xf32, #tpu.memory_space<vmem>>, %arg5: memref<32x128xf32, #tpu.memory_space<vmem>>, %arg6: memref<2x256xf32, #tpu.memory_space<vmem>>, %arg7: memref<2x32xf32, #tpu.memory_space<vmem>>, %arg8: memref<2x32xf32, #tpu.memory_space<vmem>>) attributes {dimension_semantics = [], scalar_prefetch = 0 : i64, scratch_operands = 0 : i64, tpu.core_type = #tpu.core_type<tc>} {
    %c0 = arith.constant 0 : index
    %c0_0 = arith.constant 0 : index
    %0 = vector.load %arg0[%c0, %c0_0] : memref<16x16xf32, #tpu.memory_space<vmem>>, vector<16x16xf32>
    %c0_1 = arith.constant 0 : index
    %c0_2 = arith.constant 0 : index
    %1 = vector.load %arg1[%c0_1, %c0_2] : memref<16x32xf32, #tpu.memory_space<vmem>>, vector<16x32xf32>
    %cst = arith.constant dense<0.000000e+00> : vector<16x32xf32>
    %2 = tpu.matmul %0, %1, %cst {dimension_numbers = #tpu.dot_dimension_numbers<[1], [0], [0], [1], [0, 0, 1, 1], [], []>} : vector<16x16xf32>, vector<16x32xf32>, vector<16x32xf32> -> vector<16x32xf32>
    %c0_3 = arith.constant 0 : index
    %c0_4 = arith.constant 0 : index
    %3 = vector.load %arg2[%c0_3, %c0_4] : memref<1x32xf32, #tpu.memory_space<vmem>>, vector<1x32xf32>
    %4 = vector.broadcast %3 : vector<1x32xf32> to vector<16x32xf32>
    %5 = arith.addf %2, %4 : vector<16x32xf32>
    %6 = math.tanh %5 : vector<16x32xf32>
    %c0_5 = arith.constant 0 : index
    %c0_6 = arith.constant 0 : index
    %7 = vector.load %arg3[%c0_5, %c0_6] : memref<32x128xf32, #tpu.memory_space<vmem>>, vector<32x128xf32>
    %cst_7 = arith.constant dense<0.000000e+00> : vector<16x128xf32>
    %8 = tpu.matmul %6, %7, %cst_7 {dimension_numbers = #tpu.dot_dimension_numbers<[1], [0], [0], [1], [0, 0, 1, 1], [], []>} : vector<16x32xf32>, vector<32x128xf32>, vector<16x128xf32> -> vector<16x128xf32>
    %c0_8 = arith.constant 0 : index
    %c0_9 = arith.constant 0 : index
    %9 = vector.load %arg4[%c0_8, %c0_9] : memref<1x128xf32, #tpu.memory_space<vmem>>, vector<1x128xf32>
    %10 = vector.broadcast %9 : vector<1x128xf32> to vector<16x128xf32>
    %11 = arith.addf %8, %10 : vector<16x128xf32>
    %c0_10 = arith.constant 0 : index
    %c0_11 = arith.constant 0 : index
    %12 = vector.load %arg5[%c0_10, %c0_11] : memref<32x128xf32, #tpu.memory_space<vmem>>, vector<32x128xf32>
    %cst_12 = arith.constant 0.000000e+00 : f32
    %13 = vector.broadcast %cst_12 : f32 to vector<2x32xf32>
    %cst_13 = arith.constant 0.000000e+00 : f32
    %14 = vector.broadcast %cst_13 : f32 to vector<2x32xf32>
    %15 = vector.extract_strided_slice %11 {offsets = [0, 0], sizes = [1, 128], strides = [1, 1]} : vector<16x128xf32> to vector<1x128xf32>
    %16 = vector.extract_strided_slice %11 {offsets = [8, 0], sizes = [1, 128], strides = [1, 1]} : vector<16x128xf32> to vector<1x128xf32>
    %17 = tpu.concatenate %15, %16 in 0 : vector<1x128xf32>, vector<1x128xf32> -> vector<2x128xf32>
    %cst_14 = arith.constant dense<0.000000e+00> : vector<2x128xf32>
    %18 = tpu.matmul %13, %12, %cst_14 {dimension_numbers = #tpu.dot_dimension_numbers<[1], [0], [0], [1], [0, 0, 1, 1], [], []>} : vector<2x32xf32>, vector<32x128xf32>, vector<2x128xf32> -> vector<2x128xf32>
    %19 = arith.addf %17, %18 : vector<2x128xf32>
    %20 = arith.negf %19 : vector<2x128xf32>
    %21 = math.exp %20 : vector<2x128xf32>
    %cst_15 = arith.constant 1.000000e+00 : f32
    %22 = vector.broadcast %cst_15 : f32 to vector<2x128xf32>
    %23 = arith.addf %22, %21 : vector<2x128xf32>
    %24 = arith.divf %22, %23 : vector<2x128xf32>
    %25 = vector.extract_strided_slice %24 {offsets = [0, 0], sizes = [2, 32], strides = [1, 1]} : vector<2x128xf32> to vector<2x32xf32>
    %26 = vector.extract_strided_slice %24 {offsets = [0, 32], sizes = [2, 32], strides = [1, 1]} : vector<2x128xf32> to vector<2x32xf32>
    %27 = vector.extract_strided_slice %24 {offsets = [0, 96], sizes = [2, 32], strides = [1, 1]} : vector<2x128xf32> to vector<2x32xf32>
    %28 = vector.extract_strided_slice %19 {offsets = [0, 64], sizes = [2, 32], strides = [1, 1]} : vector<2x128xf32> to vector<2x32xf32>
    %29 = math.tanh %28 : vector<2x32xf32>
    %30 = arith.mulf %26, %14 : vector<2x32xf32>
    %31 = arith.mulf %25, %29 : vector<2x32xf32>
    %32 = arith.addf %30, %31 : vector<2x32xf32>
    %33 = math.tanh %32 : vector<2x32xf32>
    %34 = arith.mulf %27, %33 : vector<2x32xf32>
    %35 = vector.extract_strided_slice %11 {offsets = [1, 0], sizes = [1, 128], strides = [1, 1]} : vector<16x128xf32> to vector<1x128xf32>
    %36 = vector.extract_strided_slice %11 {offsets = [9, 0], sizes = [1, 128], strides = [1, 1]} : vector<16x128xf32> to vector<1x128xf32>
    %37 = tpu.concatenate %35, %36 in 0 : vector<1x128xf32>, vector<1x128xf32> -> vector<2x128xf32>
    %cst_16 = arith.constant dense<0.000000e+00> : vector<2x128xf32>
    %38 = tpu.matmul %34, %12, %cst_16 {dimension_numbers = #tpu.dot_dimension_numbers<[1], [0], [0], [1], [0, 0, 1, 1], [], []>} : vector<2x32xf32>, vector<32x128xf32>, vector<2x128xf32> -> vector<2x128xf32>
    %39 = arith.addf %37, %38 : vector<2x128xf32>
    %40 = arith.negf %39 : vector<2x128xf32>
    %41 = math.exp %40 : vector<2x128xf32>
    %cst_17 = arith.constant 1.000000e+00 : f32
    %42 = vector.broadcast %cst_17 : f32 to vector<2x128xf32>
    %43 = arith.addf %42, %41 : vector<2x128xf32>
    %44 = arith.divf %42, %43 : vector<2x128xf32>
    %45 = vector.extract_strided_slice %44 {offsets = [0, 0], sizes = [2, 32], strides = [1, 1]} : vector<2x128xf32> to vector<2x32xf32>
    %46 = vector.extract_strided_slice %44 {offsets = [0, 32], sizes = [2, 32], strides = [1, 1]} : vector<2x128xf32> to vector<2x32xf32>
    %47 = vector.extract_strided_slice %44 {offsets = [0, 96], sizes = [2, 32], strides = [1, 1]} : vector<2x128xf32> to vector<2x32xf32>
    %48 = vector.extract_strided_slice %39 {offsets = [0, 64], sizes = [2, 32], strides = [1, 1]} : vector<2x128xf32> to vector<2x32xf32>
    %49 = math.tanh %48 : vector<2x32xf32>
    %50 = arith.mulf %46, %32 : vector<2x32xf32>
    %51 = arith.mulf %45, %49 : vector<2x32xf32>
    %52 = arith.addf %50, %51 : vector<2x32xf32>
    %53 = math.tanh %52 : vector<2x32xf32>
    %54 = arith.mulf %47, %53 : vector<2x32xf32>
    %55 = vector.extract_strided_slice %11 {offsets = [2, 0], sizes = [1, 128], strides = [1, 1]} : vector<16x128xf32> to vector<1x128xf32>
    %56 = vector.extract_strided_slice %11 {offsets = [10, 0], sizes = [1, 128], strides = [1, 1]} : vector<16x128xf32> to vector<1x128xf32>
    %57 = tpu.concatenate %55, %56 in 0 : vector<1x128xf32>, vector<1x128xf32> -> vector<2x128xf32>
    %cst_18 = arith.constant dense<0.000000e+00> : vector<2x128xf32>
    %58 = tpu.matmul %54, %12, %cst_18 {dimension_numbers = #tpu.dot_dimension_numbers<[1], [0], [0], [1], [0, 0, 1, 1], [], []>} : vector<2x32xf32>, vector<32x128xf32>, vector<2x128xf32> -> vector<2x128xf32>
    %59 = arith.addf %57, %58 : vector<2x128xf32>
    %60 = arith.negf %59 : vector<2x128xf32>
    %61 = math.exp %60 : vector<2x128xf32>
    %cst_19 = arith.constant 1.000000e+00 : f32
    %62 = vector.broadcast %cst_19 : f32 to vector<2x128xf32>
    %63 = arith.addf %62, %61 : vector<2x128xf32>
    %64 = arith.divf %62, %63 : vector<2x128xf32>
    %65 = vector.extract_strided_slice %64 {offsets = [0, 0], sizes = [2, 32], strides = [1, 1]} : vector<2x128xf32> to vector<2x32xf32>
    %66 = vector.extract_strided_slice %64 {offsets = [0, 32], sizes = [2, 32], strides = [1, 1]} : vector<2x128xf32> to vector<2x32xf32>
    %67 = vector.extract_strided_slice %64 {offsets = [0, 96], sizes = [2, 32], strides = [1, 1]} : vector<2x128xf32> to vector<2x32xf32>
    %68 = vector.extract_strided_slice %59 {offsets = [0, 64], sizes = [2, 32], strides = [1, 1]} : vector<2x128xf32> to vector<2x32xf32>
    %69 = math.tanh %68 : vector<2x32xf32>
    %70 = arith.mulf %66, %52 : vector<2x32xf32>
    %71 = arith.mulf %65, %69 : vector<2x32xf32>
    %72 = arith.addf %70, %71 : vector<2x32xf32>
    %73 = math.tanh %72 : vector<2x32xf32>
    %74 = arith.mulf %67, %73 : vector<2x32xf32>
    %75 = vector.extract_strided_slice %11 {offsets = [3, 0], sizes = [1, 128], strides = [1, 1]} : vector<16x128xf32> to vector<1x128xf32>
    %76 = vector.extract_strided_slice %11 {offsets = [11, 0], sizes = [1, 128], strides = [1, 1]} : vector<16x128xf32> to vector<1x128xf32>
    %77 = tpu.concatenate %75, %76 in 0 : vector<1x128xf32>, vector<1x128xf32> -> vector<2x128xf32>
    %cst_20 = arith.constant dense<0.000000e+00> : vector<2x128xf32>
    %78 = tpu.matmul %74, %12, %cst_20 {dimension_numbers = #tpu.dot_dimension_numbers<[1], [0], [0], [1], [0, 0, 1, 1], [], []>} : vector<2x32xf32>, vector<32x128xf32>, vector<2x128xf32> -> vector<2x128xf32>
    %79 = arith.addf %77, %78 : vector<2x128xf32>
    %80 = arith.negf %79 : vector<2x128xf32>
    %81 = math.exp %80 : vector<2x128xf32>
    %cst_21 = arith.constant 1.000000e+00 : f32
    %82 = vector.broadcast %cst_21 : f32 to vector<2x128xf32>
    %83 = arith.addf %82, %81 : vector<2x128xf32>
    %84 = arith.divf %82, %83 : vector<2x128xf32>
    %85 = vector.extract_strided_slice %84 {offsets = [0, 0], sizes = [2, 32], strides = [1, 1]} : vector<2x128xf32> to vector<2x32xf32>
    %86 = vector.extract_strided_slice %84 {offsets = [0, 32], sizes = [2, 32], strides = [1, 1]} : vector<2x128xf32> to vector<2x32xf32>
    %87 = vector.extract_strided_slice %84 {offsets = [0, 96], sizes = [2, 32], strides = [1, 1]} : vector<2x128xf32> to vector<2x32xf32>
    %88 = vector.extract_strided_slice %79 {offsets = [0, 64], sizes = [2, 32], strides = [1, 1]} : vector<2x128xf32> to vector<2x32xf32>
    %89 = math.tanh %88 : vector<2x32xf32>
    %90 = arith.mulf %86, %72 : vector<2x32xf32>
    %91 = arith.mulf %85, %89 : vector<2x32xf32>
    %92 = arith.addf %90, %91 : vector<2x32xf32>
    %93 = math.tanh %92 : vector<2x32xf32>
    %94 = arith.mulf %87, %93 : vector<2x32xf32>
    %95 = vector.extract_strided_slice %11 {offsets = [4, 0], sizes = [1, 128], strides = [1, 1]} : vector<16x128xf32> to vector<1x128xf32>
    %96 = vector.extract_strided_slice %11 {offsets = [12, 0], sizes = [1, 128], strides = [1, 1]} : vector<16x128xf32> to vector<1x128xf32>
    %97 = tpu.concatenate %95, %96 in 0 : vector<1x128xf32>, vector<1x128xf32> -> vector<2x128xf32>
    %cst_22 = arith.constant dense<0.000000e+00> : vector<2x128xf32>
    %98 = tpu.matmul %94, %12, %cst_22 {dimension_numbers = #tpu.dot_dimension_numbers<[1], [0], [0], [1], [0, 0, 1, 1], [], []>} : vector<2x32xf32>, vector<32x128xf32>, vector<2x128xf32> -> vector<2x128xf32>
    %99 = arith.addf %97, %98 : vector<2x128xf32>
    %100 = arith.negf %99 : vector<2x128xf32>
    %101 = math.exp %100 : vector<2x128xf32>
    %cst_23 = arith.constant 1.000000e+00 : f32
    %102 = vector.broadcast %cst_23 : f32 to vector<2x128xf32>
    %103 = arith.addf %102, %101 : vector<2x128xf32>
    %104 = arith.divf %102, %103 : vector<2x128xf32>
    %105 = vector.extract_strided_slice %104 {offsets = [0, 0], sizes = [2, 32], strides = [1, 1]} : vector<2x128xf32> to vector<2x32xf32>
    %106 = vector.extract_strided_slice %104 {offsets = [0, 32], sizes = [2, 32], strides = [1, 1]} : vector<2x128xf32> to vector<2x32xf32>
    %107 = vector.extract_strided_slice %104 {offsets = [0, 96], sizes = [2, 32], strides = [1, 1]} : vector<2x128xf32> to vector<2x32xf32>
    %108 = vector.extract_strided_slice %99 {offsets = [0, 64], sizes = [2, 32], strides = [1, 1]} : vector<2x128xf32> to vector<2x32xf32>
    %109 = math.tanh %108 : vector<2x32xf32>
    %110 = arith.mulf %106, %92 : vector<2x32xf32>
    %111 = arith.mulf %105, %109 : vector<2x32xf32>
    %112 = arith.addf %110, %111 : vector<2x32xf32>
    %113 = math.tanh %112 : vector<2x32xf32>
    %114 = arith.mulf %107, %113 : vector<2x32xf32>
    %115 = vector.extract_strided_slice %11 {offsets = [5, 0], sizes = [1, 128], strides = [1, 1]} : vector<16x128xf32> to vector<1x128xf32>
    %116 = vector.extract_strided_slice %11 {offsets = [13, 0], sizes = [1, 128], strides = [1, 1]} : vector<16x128xf32> to vector<1x128xf32>
    %117 = tpu.concatenate %115, %116 in 0 : vector<1x128xf32>, vector<1x128xf32> -> vector<2x128xf32>
    %cst_24 = arith.constant dense<0.000000e+00> : vector<2x128xf32>
    %118 = tpu.matmul %114, %12, %cst_24 {dimension_numbers = #tpu.dot_dimension_numbers<[1], [0], [0], [1], [0, 0, 1, 1], [], []>} : vector<2x32xf32>, vector<32x128xf32>, vector<2x128xf32> -> vector<2x128xf32>
    %119 = arith.addf %117, %118 : vector<2x128xf32>
    %120 = arith.negf %119 : vector<2x128xf32>
    %121 = math.exp %120 : vector<2x128xf32>
    %cst_25 = arith.constant 1.000000e+00 : f32
    %122 = vector.broadcast %cst_25 : f32 to vector<2x128xf32>
    %123 = arith.addf %122, %121 : vector<2x128xf32>
    %124 = arith.divf %122, %123 : vector<2x128xf32>
    %125 = vector.extract_strided_slice %124 {offsets = [0, 0], sizes = [2, 32], strides = [1, 1]} : vector<2x128xf32> to vector<2x32xf32>
    %126 = vector.extract_strided_slice %124 {offsets = [0, 32], sizes = [2, 32], strides = [1, 1]} : vector<2x128xf32> to vector<2x32xf32>
    %127 = vector.extract_strided_slice %124 {offsets = [0, 96], sizes = [2, 32], strides = [1, 1]} : vector<2x128xf32> to vector<2x32xf32>
    %128 = vector.extract_strided_slice %119 {offsets = [0, 64], sizes = [2, 32], strides = [1, 1]} : vector<2x128xf32> to vector<2x32xf32>
    %129 = math.tanh %128 : vector<2x32xf32>
    %130 = arith.mulf %126, %112 : vector<2x32xf32>
    %131 = arith.mulf %125, %129 : vector<2x32xf32>
    %132 = arith.addf %130, %131 : vector<2x32xf32>
    %133 = math.tanh %132 : vector<2x32xf32>
    %134 = arith.mulf %127, %133 : vector<2x32xf32>
    %135 = vector.extract_strided_slice %11 {offsets = [6, 0], sizes = [1, 128], strides = [1, 1]} : vector<16x128xf32> to vector<1x128xf32>
    %136 = vector.extract_strided_slice %11 {offsets = [14, 0], sizes = [1, 128], strides = [1, 1]} : vector<16x128xf32> to vector<1x128xf32>
    %137 = tpu.concatenate %135, %136 in 0 : vector<1x128xf32>, vector<1x128xf32> -> vector<2x128xf32>
    %cst_26 = arith.constant dense<0.000000e+00> : vector<2x128xf32>
    %138 = tpu.matmul %134, %12, %cst_26 {dimension_numbers = #tpu.dot_dimension_numbers<[1], [0], [0], [1], [0, 0, 1, 1], [], []>} : vector<2x32xf32>, vector<32x128xf32>, vector<2x128xf32> -> vector<2x128xf32>
    %139 = arith.addf %137, %138 : vector<2x128xf32>
    %140 = arith.negf %139 : vector<2x128xf32>
    %141 = math.exp %140 : vector<2x128xf32>
    %cst_27 = arith.constant 1.000000e+00 : f32
    %142 = vector.broadcast %cst_27 : f32 to vector<2x128xf32>
    %143 = arith.addf %142, %141 : vector<2x128xf32>
    %144 = arith.divf %142, %143 : vector<2x128xf32>
    %145 = vector.extract_strided_slice %144 {offsets = [0, 0], sizes = [2, 32], strides = [1, 1]} : vector<2x128xf32> to vector<2x32xf32>
    %146 = vector.extract_strided_slice %144 {offsets = [0, 32], sizes = [2, 32], strides = [1, 1]} : vector<2x128xf32> to vector<2x32xf32>
    %147 = vector.extract_strided_slice %144 {offsets = [0, 96], sizes = [2, 32], strides = [1, 1]} : vector<2x128xf32> to vector<2x32xf32>
    %148 = vector.extract_strided_slice %139 {offsets = [0, 64], sizes = [2, 32], strides = [1, 1]} : vector<2x128xf32> to vector<2x32xf32>
    %149 = math.tanh %148 : vector<2x32xf32>
    %150 = arith.mulf %146, %132 : vector<2x32xf32>
    %151 = arith.mulf %145, %149 : vector<2x32xf32>
    %152 = arith.addf %150, %151 : vector<2x32xf32>
    %153 = math.tanh %152 : vector<2x32xf32>
    %154 = arith.mulf %147, %153 : vector<2x32xf32>
    %155 = vector.extract_strided_slice %11 {offsets = [7, 0], sizes = [1, 128], strides = [1, 1]} : vector<16x128xf32> to vector<1x128xf32>
    %156 = vector.extract_strided_slice %11 {offsets = [15, 0], sizes = [1, 128], strides = [1, 1]} : vector<16x128xf32> to vector<1x128xf32>
    %157 = tpu.concatenate %155, %156 in 0 : vector<1x128xf32>, vector<1x128xf32> -> vector<2x128xf32>
    %cst_28 = arith.constant dense<0.000000e+00> : vector<2x128xf32>
    %158 = tpu.matmul %154, %12, %cst_28 {dimension_numbers = #tpu.dot_dimension_numbers<[1], [0], [0], [1], [0, 0, 1, 1], [], []>} : vector<2x32xf32>, vector<32x128xf32>, vector<2x128xf32> -> vector<2x128xf32>
    %159 = arith.addf %157, %158 : vector<2x128xf32>
    %160 = arith.negf %159 : vector<2x128xf32>
    %161 = math.exp %160 : vector<2x128xf32>
    %cst_29 = arith.constant 1.000000e+00 : f32
    %162 = vector.broadcast %cst_29 : f32 to vector<2x128xf32>
    %163 = arith.addf %162, %161 : vector<2x128xf32>
    %164 = arith.divf %162, %163 : vector<2x128xf32>
    %165 = vector.extract_strided_slice %164 {offsets = [0, 0], sizes = [2, 32], strides = [1, 1]} : vector<2x128xf32> to vector<2x32xf32>
    %166 = vector.extract_strided_slice %164 {offsets = [0, 32], sizes = [2, 32], strides = [1, 1]} : vector<2x128xf32> to vector<2x32xf32>
    %167 = vector.extract_strided_slice %164 {offsets = [0, 96], sizes = [2, 32], strides = [1, 1]} : vector<2x128xf32> to vector<2x32xf32>
    %168 = vector.extract_strided_slice %159 {offsets = [0, 64], sizes = [2, 32], strides = [1, 1]} : vector<2x128xf32> to vector<2x32xf32>
    %169 = math.tanh %168 : vector<2x32xf32>
    %170 = arith.mulf %166, %152 : vector<2x32xf32>
    %171 = arith.mulf %165, %169 : vector<2x32xf32>
    %172 = arith.addf %170, %171 : vector<2x32xf32>
    %173 = math.tanh %172 : vector<2x32xf32>
    %174 = arith.mulf %167, %173 : vector<2x32xf32>
    %175 = tpu.concatenate %34, %54, %74, %94, %114, %134, %154, %174 in 1 : vector<2x32xf32>, vector<2x32xf32>, vector<2x32xf32>, vector<2x32xf32>, vector<2x32xf32>, vector<2x32xf32>, vector<2x32xf32>, vector<2x32xf32> -> vector<2x256xf32>
    %c0_30 = arith.constant 0 : index
    %c0_31 = arith.constant 0 : index
    %176 = vector.load %arg6[%c0_30, %c0_31] : memref<2x256xf32, #tpu.memory_space<vmem>>, vector<2x256xf32>
    tpu.vector_store %arg6[%c0_30, %c0_31], %175 {strides = array<i32>} : memref<2x256xf32, #tpu.memory_space<vmem>>, vector<2x256xf32>,
    %c0_32 = arith.constant 0 : index
    %c0_33 = arith.constant 0 : index
    %177 = vector.load %arg7[%c0_32, %c0_33] : memref<2x32xf32, #tpu.memory_space<vmem>>, vector<2x32xf32>
    tpu.vector_store %arg7[%c0_32, %c0_33], %174 {strides = array<i32>} : memref<2x32xf32, #tpu.memory_space<vmem>>, vector<2x32xf32>,
    %c0_34 = arith.constant 0 : index
    %c0_35 = arith.constant 0 : index
    %178 = vector.load %arg8[%c0_34, %c0_35] : memref<2x32xf32, #tpu.memory_space<vmem>>, vector<2x32xf32>
    tpu.vector_store %arg8[%c0_34, %c0_35], %172 {strides = array<i32>} : memref<2x32xf32, #tpu.memory_space<vmem>>, vector<2x32xf32>,
    return
  }
}

</mosaic_0001>

<bundles_post_ra>
// kernel: lstm_encoder_forward.1
= control target key start
LH: loop header
LB: loop body
LE: loop exit
PB: predicated region body
PF: predicated region fallthrough
CT: control target
= control target key end

     0   :  { %14 = vsyncpa [#allocation3], 0  ;;  %s1860_s0 = inlined_call_operand.hbm [shape: f32[16,16], index: 0, kind: input, shape index: {}]   ;;  %s1861_s1 = inlined_call_operand.hbm [shape: f32[16,32], index: 1, kind: input, shape index: {}]   ;;  %s1862_s2 = inlined_call_operand.vmem [shape: f32[1,32], index: 2, kind: input, shape index: {}]   ;;  %s1863_s3 = inlined_call_operand.hbm [shape: f32[32,128], index: 3, kind: input, shape index: {}]   ;;  %s1864_s4 = inlined_call_operand.vmem [shape: f32[1,128], index: 4, kind: input, shape index: {}]   ;;  %s1865_s5 = inlined_call_operand.hbm [shape: f32[32,128], index: 5, kind: input, shape index: {}]   ;;  %s1866_s6 = inlined_call_operand.vmem [shape: f32[2,256], index: 6, kind: output, shape index: {0}]   ;;  %s1867_s7 = inlined_call_operand.hbm [shape: f32[2,32], index: 7, kind: output, shape index: {1}]   ;;  %s1868_s8 = inlined_call_operand.hbm [shape: f32[2,32], index: 8, kind: output, shape index: {2}]  }
   0x1   :  { %15 = vsyncpa [#allocation6], 0 }
   0x2   :  { %16 = vsyncpa [#allocation9], 0 }
   0x3   :  { %17 = vsyncpa [#allocation4], 0 }
   0x4   :  { %18 = vsyncpa [#allocation12], 0  ;;  %s1581_s27 = smov [#allocation5]   ;;  %s1582_s29 = smov [#allocation2]  }
   0x5   :  { %s36_s28 = sshll.u32 %s1581_s27, 4  ;;  %s24_s30 = sshll.u32 %s1582_s29, 4  ;;  %s37_s28 = int_to_ptr.vmem [resolvable:$true] %s36_s28  ;;  %s25_s30 = int_to_ptr.vmem [resolvable:$true] %s24_s30 }
   0x6   :  { %s1459_s9 = scalar_lea.vmem %s37_s28, 256  ;;  %p1464_p1 = scmp.lt.s32.totalorder %s37_s28, %s37_s28 }
   0x7   :  { %p1460_p0 = scmp.ne.s32.totalorder %s37_s28, %s1459_s9  ;;  %p1465_p2 = scmp.lt.s32.totalorder %s1459_s9, %s1459_s9 }
   0x9   :  { %p1466_p3 = por %p1465_p2, %p1464_p1 }
   0xb   :  { %p1467_p4 = pnand %p1466_p3, %p1460_p0 }
   0xd   :  { %1470 = shalt.err (!%p1467_p4)
}
   0xe   :  { %s1583_s10 = smov 128   ;;  %s1584_s11 = smov 8  }
   0xf   :  { %42 = dma.hbm_to_vmem [thread:$0]  %s1861_s1, 256, %s37_s28, [#allocation6], %s1583_s10, %s1583_s10, %s1584_s11  }
  0x10   :  { %s1479_s14 = scalar_lea.vmem %s25_s30, 256  ;;  %p1484_p6 = scmp.lt.s32.totalorder %s25_s30, %s25_s30 }
  0x11   :  { %p1480_p5 = scmp.ne.s32.totalorder %s25_s30, %s1479_s14  ;;  %p1485_p7 = scmp.lt.s32.totalorder %s1479_s14, %s1479_s14 }
  0x13   :  { %p1486_p8 = por %p1485_p7, %p1484_p6 }
  0x15   :  { %p1487_p9 = pnand %p1486_p8, %p1480_p5 }
  0x17   :  { %1490 = shalt.err (!%p1487_p9)
}
  0x18   :  { %30 = dma.hbm_to_vmem [thread:$0]  %s1860_s0, 256, %s25_s30, [#allocation3], %s1583_s10, %s1583_s10, %s1584_s11  }
  0x19   :  { %s1585_s17 = smov [#allocation7]   ;;  %s1586_s19 = smov [#allocation8]  }
  0x1a   :  { %s50_s18 = sshll.u32 %s1585_s17, 4  ;;  %s64_s20 = sshll.u32 %s1586_s19, 4  ;;  %s51_s18 = int_to_ptr.vmem [resolvable:$true] %s50_s18  ;;  %s65_s20 = int_to_ptr.vmem [resolvable:$true] %s64_s20 }
  0x1b   :  { %s1499_s1 = scalar_lea.vmem %s51_s18, 512  ;;  %p1504_p11 = scmp.lt.s32.totalorder %s51_s18, %s51_s18 }
  0x1c   :  { %p1500_p10 = scmp.ne.s32.totalorder %s51_s18, %s1499_s1  ;;  %p1505_p12 = scmp.lt.s32.totalorder %s1499_s1, %s1499_s1 }
  0x1e   :  { %p1506_p13 = por %p1505_p12, %p1504_p11 }
  0x20   :  { %p1507_p0 = pnand %p1506_p13, %p1500_p10 }
  0x22   :  { %1510 = shalt.err (!%p1507_p0)
}
  0x23   :  { %56 = dma.hbm_to_vmem [thread:$0]  %s1863_s3, 512, %s51_s18, [#allocation6], %s1583_s10, %s1583_s10, %s1584_s11  }
  0x24   :  { %s1519_s0 = scalar_lea.vmem %s65_s20, 512  ;;  %p1524_p2 = scmp.lt.s32.totalorder %s65_s20, %s65_s20 }
  0x25   :  { %p1520_p1 = scmp.ne.s32.totalorder %s65_s20, %s1519_s0  ;;  %p1525_p3 = scmp.lt.s32.totalorder %s1519_s0, %s1519_s0 }
  0x27   :  { %p1526_p4 = por %p1525_p3, %p1524_p2 }
  0x29   :  { %p1527_p5 = pnand %p1526_p4, %p1520_p1 }
  0x2b   :  { %1530 = shalt.err (!%p1527_p5)
}
  0x2c   :  { %70 = dma.hbm_to_vmem [thread:$0]  %s1865_s5, 512, %s65_s20, [#allocation9], %s1583_s10, %s1583_s10, %s1584_s11  }
  0x2d   :  { %1571 = dma.done.wait [#allocation3], 256  }
  0x2e   :  { %1572 = vsyncadd [#allocation3], 4294967040 }
  0x2f   :  { %1573 = dma.done.wait [#allocation6], 768  }
  0x30   :  { %1574 = vsyncadd [#allocation6], 4294966528 }
  0x31   :  { %1575 = dma.done.wait [#allocation9], 512  }
  0x32   :  { %1576 = vsyncadd [#allocation9], 4294966784  ;;  %vm94_vm0 = vcmask 130048   ;;  %v86_v0 = vld [vmem:[#allocation5 + $0x8] sm:$0xff]  ;;  %v85_v1 = vld [vmem:[#allocation5] sm:$0xff]  ;;  %v1587_v6 = vmov 0.0  }
  0x33   :  { %v83_v2 = vld [vmem:[#allocation2] sm:$0xff]  ;;  %1264 = vmatprep.subr.mxu0 %v86_v0  ;;  %v84_v3 = vld [vmem:[#allocation2 + $0x8] sm:$0xff]  ;;  %v181_v4 = vld [vmem:[#allocation7 + $0x18] sm:$0xff]  ;;  %vm1588_vm1 = vmmov 0   ;;  %vm189_vm2 = vcmask 261120   ;;  %vm278_vm3 = vcmask 1040384  }
  0x34   :  { %1268 = vmatprep.mubr.msk.f32.mxu0 %vm94_vm0, %v83_v2  ;;  %1265 = vmatpush3.msra.mxu0 %v86_v0  ;;  %v180_v5 = vld [vmem:[#allocation7 + $0x10] sm:$0xff]  ;;  %v1664_v7 = vld [vmem:[#allocation8 + $0x18] sm:$0xff]  ;;  %v179_v9 = vld [vmem:[#allocation7 + $0x8] sm:$0xff]  ;;  %s1590_s26 = smov 32   ;;  %s1591_s27 = smov 96   ;;  %vm1127_vm4 = vcmask 523264  }
  0x35   :  { %1266 = vmatprep.subr.mxu0 %v85_v1  ;;  %1271 = vmatprep.subr.mxu1 %v181_v4  ;;  %v1666_v8 = vld [vmem:[#allocation8 + $0x10] sm:$0xff]  ;;  %v178_v10 = vld [vmem:[#allocation7] sm:$0xff]  ;;  %v1673_v11 = vld [vmem:[#allocation8 + $0x8] sm:$0xff]  ;;  %vm1129_vm5 = vcmask 785408   ;;  %s1592_s28 = smov [#allocation11]   ;;  %vm1150_vm6 = vcmask 254976  }
  0x36   :  { %1267 = vmatpush3.msra.mxu0 %v85_v1  ;;  %1272 = vmatpush3.msra.mxu1 %v181_v4  ;;  %v1676_v12 = vld [vmem:[#allocation8] sm:$0xff]  ;;  %s1175_s29 = sshll.u32 %s1592_s28, 4  ;;  %s1176_s29 = int_to_ptr.vmem [resolvable:$true] %s1175_s29 }
  0x37   :  { %1269 = vmatmul.mubr.msk.f32.vlgmr.msra.gmra.mxu0 %vm94_vm0, %v84_v3  ;;  %1282 = vmatprep.subr.mxu0 %v1587_v6  ;;  %v1192_v13 = vld [vmem:[%s1862_s2] ss:$0 sm:$0xff]  ;;  %s1531_s10 = scalar_lea.vmem %s1176_s29, 32  ;;  %p1536_p7 = scmp.lt.s32.totalorder %s1176_s29, %s1176_s29 }
  0x38   :  { %1283 = vmatpush3.msra.mxu0 %v1664_v7  ;;  %1273 = vmatprep.subr.mxu1 %v180_v5  ;;  %v1195_v22 = vld [vmem:[%s1864_s4] ss:$0 sm:$0xff]  ;;  %s1589_s4 = smov 64   ;;  %p1532_p6 = scmp.ne.s32.totalorder %s1176_s29, %s1531_s10 }
  0x39   :  { %1284 = vmatprep.subr.mxu0 %v1587_v6  ;;  %1274 = vmatpush3.msra.mxu1 %v180_v5  ;;  %p1537_p8 = scmp.lt.s32.totalorder %s1531_s10, %s1531_s10 }
  0x3a   :  { %1285 = vmatpush3.msra.mxu0 %v1666_v8  ;;  %1275 = vmatprep.subr.mxu1 %v179_v9 }
  0x3b   :  { %1286 = vmatprep.subr.mxu0 %v1587_v6  ;;  %1276 = vmatpush3.msra.mxu1 %v179_v9  ;;  %p1538_p9 = por %p1537_p8, %p1536_p7 }
  0x3c   :  { %1277 = vmatprep.subr.mxu1 %v178_v10  ;;  %1287 = vmatpush3.msra.mxu0 %v1673_v11 }
  0x3d   :  { %1278 = vmatpush3.msra.mxu1 %v178_v10  ;;  %1288 = vmatprep.subr.mxu0 %v1587_v6  ;;  %p1539_p10 = pnand %p1538_p9, %p1532_p6 }
  0x3e   :  { %1293 = vmatprep.subr.mxu1 %v1587_v6  ;;  %1290 = vmatprep.mubr.msk.f32.mxu0 %vm1588_vm1, %v1587_v6 }
  0x3f   :  { %1289 = vmatpush3.msra.mxu0 %v1676_v12 }
  0x40   :  { %1291 = vmatmul.mubr.f32.vlgmr.msra.gmra.mxu0 %v1587_v6  ;;  %1304 = vmatprep.subr.mxu0 %v1587_v6 }
  0x41   :  { %1305 = vmatpush3.msra.mxu0 %v1664_v7  ;;  %1312 = vmatprep.mubr.msk.f32.mxu0 %vm1588_vm1, %v1587_v6 }
  0x42   :  { %1306 = vmatprep.subr.mxu0 %v1587_v6 }
  0x43   :  { %1307 = vmatpush3.msra.mxu0 %v1666_v8 }
  0x44   :  { %1308 = vmatprep.subr.mxu0 %v1587_v6 }
  0x45   :  { %1309 = vmatpush3.msra.mxu0 %v1673_v11 }
  0x46   :  { %1310 = vmatprep.subr.mxu0 %v1587_v6 }
  0x47   :  { %1311 = vmatpush3.msra.mxu0 %v1676_v12 }
  0x48   :  { %1326 = vmatprep.subr.mxu0 %v1587_v6 }
  0xf7   :  { %v1270_v14 = vpop.f32.mrf.mxu0 }
  0xf8   :  { %v173_v15 = vadd.f32 %v1270_v14, %v1192_v13 }
  0xf9   :  { %v167_v16 = vpop.f32.mrf.mxu0 }
  0xfa   :  { %v168_v17 = vadd.f32 %v1192_v13, %v167_v16 }
  0xfc   :  { %1383 = vtanh.f32 %v168_v17 }
  0xfd   :  { %1385 = vtanh.f32 %v173_v15 }
 0x100   :  { %v349_v20 = vpop.f32.mrf.mxu0 }
 0x102   :  { %v1292_v21 = vpop.f32.mrf.mxu0 }
 0x109   :  { %v1384_v18 = vpop.eup %1383 }
 0x10a   :  { %v1386_v19 = vpop.eup %1385  ;;  %1279 = vmatprep.mubr.msk.f32.mxu1 %vm189_vm2, %v1384_v18 }
 0x10b   :  { %1280 = vmatmul.mubr.msk.f32.vlgmr.msra.gmra.mxu1 %vm189_vm2, %v1386_v19 }
 0x10c   :  { %1294 = vmatpush3.msra.mxu1 %v1664_v7  ;;  %1301 = vmatprep.mubr.msk.f32.mxu1 %vm1588_vm1, %v1587_v6 }
 0x10d   :  { %1295 = vmatprep.subr.mxu1 %v1587_v6 }
 0x10e   :  { %1296 = vmatpush3.msra.mxu1 %v1666_v8 }
 0x10f   :  { %1297 = vmatprep.subr.mxu1 %v1587_v6 }
 0x110   :  { %1298 = vmatpush3.msra.mxu1 %v1673_v11 }
 0x111   :  { %1299 = vmatprep.subr.mxu1 %v1587_v6 }
 0x112   :  { %1300 = vmatpush3.msra.mxu1 %v1676_v12 }
 0x113   :  { %1315 = vmatprep.subr.mxu1 %v1587_v6 }
 0x1cb   :  { %v1281_v23 = vpop.f32.mrf.mxu1 }
 0x1cc   :  { %v268_v24 = vadd.f32 %v1281_v23, %v1195_v22 }
 0x1cd   :  { %v262_v25 = vpop.f32.mrf.mxu1 }
 0x1ce   :  { %v263_v26 = vadd.f32 %v1195_v22, %v262_v25  ;;  %v276_v27 = vrot.slane %v268_v24, 7  ;;  %v484_v28 = vrot.slane %v268_v24, 1  ;;  %v589_v29 = vrot.slane %v268_v24, 2 }
 0x1cf   :  { %v694_v30 = vrot.slane %v268_v24, 3  ;;  %v799_v31 = vrot.slane %v268_v24, 4  ;;  %v904_v32 = vrot.slane %v268_v24, 5  ;;  %v1009_v33 = vrot.slane %v268_v24, 6 }
 0x1d0   :  { %v279_v34 = vsel %vm278_vm3, %v263_v26, %v276_v27  ;;  %v379_v35 = vrot.slane %v263_v26, 1  ;;  %v482_v36 = vrot.slane %v263_v26, 2  ;;  %v587_v37 = vrot.slane %v263_v26, 3 }
 0x1d1   :  { %v353_v38 = vadd.f32 %v349_v20, %v279_v34  ;;  %v692_v39 = vrot.slane %v263_v26, 4  ;;  %v797_v40 = vrot.slane %v263_v26, 5  ;;  %v902_v41 = vrot.slane %v263_v26, 6 }
 0x1d2   :  { %v381_v42 = vsel %vm278_vm3, %v379_v35, %v268_v24  ;;  %v1715_v43 = vsel %vm278_vm3, %v482_v36, %v484_v28  ;;  %v1718_v44 = vsel %vm278_vm3, %v587_v37, %v589_v29  ;;  %v1007_v45 = vrot.slane %v263_v26, 7 }
 0x1d3   :  { %1387 = vtanh.f32 %v353_v38  ;;  %v1721_v46 = vsel %vm278_vm3, %v692_v39, %v694_v30  ;;  %v1724_v47 = vsel %vm278_vm3, %v797_v40, %v799_v31  ;;  %v1727_v48 = vsel %vm278_vm3, %v902_v41, %v904_v32 }
 0x1d4   :  { %v1730_v49 = vsel %vm278_vm3, %v1007_v45, %v1009_v33  ;;  %v1198_v51 = vmul.f32 -1.442695, %v353_v38 }
 0x1d6   :  { %1389 = vpow2.f32 %v1198_v51 }
 0x1e0   :  { %v1388_v50 = vpop.eup %1387 }
 0x1e1   :  { %363 = vrot.lane.b32.xlu0 %v1388_v50, %s1589_s4 }
 0x1e3   :  { %v1390_v52 = vpop.eup %1389 }
 0x1e4   :  { %v357_v53 = vadd.f32 1.0, %v1390_v52 }
 0x1e6   :  { %1391 = vrcp.f32 %v357_v53 }
 0x1f3   :  { %v1392_v54 = vpop.eup %1391 }
 0x1f4   :  { %v361_v57 = vmul.f32 0.0, %v1392_v54 }
 0x253   :  { %v364_v55 = vpop.permute.xlu0 %363 }
 0x254   :  { %v366_v56 = vmul.f32 %v1392_v54, %v364_v55 }
 0x256   :  { %368 = vrot.lane.b32.xlu0 %v366_v56, %s1590_s26 }
 0x2c8   :  { %v369_v58 = vpop.permute.xlu0 %368 }
 0x2c9   :  { %v371_v59 = vadd.f32 %v369_v58, %v361_v57 }
 0x2cb   :  { %1393 = vtanh.f32 %v371_v59 }
 0x2d8   :  { %v1394_v60 = vpop.eup %1393 }
 0x2d9   :  { %374 = vrot.lane.b32.xlu1 %v1394_v60, %s1589_s4 }
 0x34b   :  { %v375_v61 = vpop.permute.xlu1 %374 }
 0x34c   :  { %v377_v62 = vmul.f32 %v1392_v54, %v375_v61 }
 0x34e   :  { %383 = vrot.lane.b32.xlu1 %v377_v62, %s1590_s26 }
 0x3c0   :  { %v1736_v63 = vpop.permute.xlu1 %383 }
 0x3c1   :  { %1302 = vmatmul.mubr.msk.f32.vlgmr.msra.gmra.mxu1 %vm189_vm2, %v1736_v63 }
 0x3c2   :  { %1316 = vmatpush3.msra.mxu1 %v1664_v7  ;;  %1323 = vmatprep.mubr.msk.f32.mxu1 %vm1588_vm1, %v1587_v6 }
 0x3c3   :  { %1317 = vmatprep.subr.mxu1 %v1587_v6 }
 0x3c4   :  { %1318 = vmatpush3.msra.mxu1 %v1666_v8 }
 0x3c5   :  { %1319 = vmatprep.subr.mxu1 %v1587_v6 }
 0x3c6   :  { %1320 = vmatpush3.msra.mxu1 %v1673_v11 }
 0x3c7   :  { %1321 = vmatprep.subr.mxu1 %v1587_v6 }
 0x3c8   :  { %1322 = vmatpush3.msra.mxu1 %v1676_v12 }
 0x3c9   :  { %1337 = vmatprep.subr.mxu1 %v1587_v6 }
 0x481   :  { %v453_v0 = vpop.f32.mrf.mxu1 }
 0x482   :  { %v457_v1 = vadd.f32 %v453_v0, %v381_v42 }
 0x483   :  { %v1303_v2 = vpop.f32.mrf.mxu1 }
 0x484   :  { %1395 = vtanh.f32 %v457_v1  ;;  %v1200_v4 = vmul.f32 -1.442695, %v457_v1 }
 0x486   :  { %1397 = vpow2.f32 %v1200_v4 }
 0x491   :  { %v1396_v3 = vpop.eup %1395 }
 0x492   :  { %467 = vrot.lane.b32.xlu0 %v1396_v3, %s1589_s4 }
 0x493   :  { %v1398_v5 = vpop.eup %1397 }
 0x494   :  { %v461_v9 = vadd.f32 1.0, %v1398_v5 }
 0x496   :  { %1399 = vrcp.f32 %v461_v9 }
 0x4a3   :  { %v1400_v10 = vpop.eup %1399 }
 0x4a4   :  { %v465_v15 = vmul.f32 %v1400_v10, %v371_v59 }
 0x504   :  { %v468_v13 = vpop.permute.xlu0 %467 }
 0x505   :  { %v470_v14 = vmul.f32 %v1400_v10, %v468_v13 }
 0x507   :  { %472 = vrot.lane.b32.xlu1 %v470_v14, %s1590_s26 }
 0x579   :  { %v473_v16 = vpop.permute.xlu1 %472 }
 0x57a   :  { %v475_v17 = vadd.f32 %v473_v16, %v465_v15 }
 0x57c   :  { %1401 = vtanh.f32 %v475_v17 }
 0x589   :  { %v1402_v18 = vpop.eup %1401 }
 0x58a   :  { %478 = vrot.lane.b32.xlu0 %v1402_v18, %s1589_s4 }
 0x5fc   :  { %v479_v19 = vpop.permute.xlu0 %478 }
 0x5fd   :  { %v1753_v20 = vmul.f32 %v1400_v10, %v479_v19 }
 0x5ff   :  { %488 = vrot.lane.b32.xlu1 %v1753_v20, %s1590_s26 }
 0x671   :  { %v489_v21 = vpop.permute.xlu1 %488 }
 0x672   :  { %1313 = vmatmul.mubr.msk.f32.vlgmr.msra.gmra.mxu0 %vm189_vm2, %v489_v21 }
 0x673   :  { %1327 = vmatpush3.msra.mxu0 %v1664_v7  ;;  %1334 = vmatprep.mubr.msk.f32.mxu0 %vm1588_vm1, %v1587_v6 }
 0x674   :  { %1328 = vmatprep.subr.mxu0 %v1587_v6 }
 0x675   :  { %1329 = vmatpush3.msra.mxu0 %v1666_v8 }
 0x676   :  { %1330 = vmatprep.subr.mxu0 %v1587_v6 }
 0x677   :  { %1331 = vmatpush3.msra.mxu0 %v1673_v11 }
 0x678   :  { %1332 = vmatprep.subr.mxu0 %v1587_v6 }
 0x679   :  { %1333 = vmatpush3.msra.mxu0 %v1676_v12 }
 0x67a   :  { %1348 = vmatprep.subr.mxu0 %v1587_v6 }
 0x732   :  { %v558_v22 = vpop.f32.mrf.mxu0 }
 0x733   :  { %v562_v23 = vadd.f32 %v558_v22, %v1715_v43 }
 0x734   :  { %v1314_v24 = vpop.f32.mrf.mxu0 }
 0x735   :  { %1403 = vtanh.f32 %v562_v23  ;;  %v1202_v26 = vmul.f32 -1.442695, %v562_v23 }
 0x737   :  { %1405 = vpow2.f32 %v1202_v26 }
 0x742   :  { %v1404_v25 = vpop.eup %1403 }
 0x743   :  { %572 = vrot.lane.b32.xlu0 %v1404_v25, %s1589_s4 }
 0x744   :  { %v1406_v27 = vpop.eup %1405 }
 0x745   :  { %v566_v28 = vadd.f32 1.0, %v1406_v27 }
 0x747   :  { %1407 = vrcp.f32 %v566_v28 }
 0x754   :  { %v1408_v29 = vpop.eup %1407 }
 0x755   :  { %v570_v32 = vmul.f32 %v1408_v29, %v475_v17 }
 0x7b5   :  { %v573_v30 = vpop.permute.xlu0 %572 }
 0x7b6   :  { %v575_v31 = vmul.f32 %v1408_v29, %v573_v30 }
 0x7b8   :  { %577 = vrot.lane.b32.xlu1 %v575_v31, %s1590_s26 }
 0x82a   :  { %v578_v33 = vpop.permute.xlu1 %577 }
 0x82b   :  { %v580_v34 = vadd.f32 %v578_v33, %v570_v32 }
 0x82d   :  { %1409 = vtanh.f32 %v580_v34 }
 0x83a   :  { %v1410_v35 = vpop.eup %1409 }
 0x83b   :  { %583 = vrot.lane.b32.xlu0 %v1410_v35, %s1589_s4 }
 0x8ad   :  { %v584_v36 = vpop.permute.xlu0 %583 }
 0x8ae   :  { %v1772_v37 = vmul.f32 %v1408_v29, %v584_v36 }
 0x8b0   :  { %593 = vrot.lane.b32.xlu1 %v1772_v37, %s1590_s26 }
 0x922   :  { %v594_v38 = vpop.permute.xlu1 %593 }
 0x923   :  { %1324 = vmatmul.mubr.msk.f32.vlgmr.msra.gmra.mxu1 %vm189_vm2, %v594_v38 }
 0x924   :  { %1338 = vmatpush3.msra.mxu1 %v1664_v7  ;;  %1345 = vmatprep.mubr.msk.f32.mxu1 %vm1588_vm1, %v1587_v6 }
 0x925   :  { %1339 = vmatprep.subr.mxu1 %v1587_v6 }
 0x926   :  { %1340 = vmatpush3.msra.mxu1 %v1666_v8 }
 0x927   :  { %1341 = vmatprep.subr.mxu1 %v1587_v6 }
 0x928   :  { %1342 = vmatpush3.msra.mxu1 %v1673_v11 }
 0x929   :  { %1343 = vmatprep.subr.mxu1 %v1587_v6 }
 0x92a   :  { %1344 = vmatpush3.msra.mxu1 %v1676_v12 }
 0x92b   :  { %1359 = vmatprep.subr.mxu1 %v1587_v6 }
 0x9e3   :  { %v663_v39 = vpop.f32.mrf.mxu1 }
 0x9e4   :  { %v667_v40 = vadd.f32 %v663_v39, %v1718_v44 }
 0x9e5   :  { %v1325_v41 = vpop.f32.mrf.mxu1 }
 0x9e6   :  { %1411 = vtanh.f32 %v667_v40  ;;  %v1204_v43 = vmul.f32 -1.442695, %v667_v40 }
 0x9e8   :  { %1413 = vpow2.f32 %v1204_v43 }
 0x9f3   :  { %v1412_v42 = vpop.eup %1411 }
 0x9f4   :  { %677 = vrot.lane.b32.xlu0 %v1412_v42, %s1589_s4 }
 0x9f5   :  { %v1414_v45 = vpop.eup %1413 }
 0x9f6   :  { %v671_v50 = vadd.f32 1.0, %v1414_v45 }
 0x9f8   :  { %1415 = vrcp.f32 %v671_v50 }
 0xa05   :  { %v1416_v51 = vpop.eup %1415 }
 0xa06   :  { %v675_v54 = vmul.f32 %v1416_v51, %v580_v34 }
 0xa66   :  { %v678_v52 = vpop.permute.xlu0 %677 }
 0xa67   :  { %v680_v53 = vmul.f32 %v1416_v51, %v678_v52 }
 0xa69   :  { %682 = vrot.lane.b32.xlu1 %v680_v53, %s1590_s26 }
 0xadb   :  { %v683_v55 = vpop.permute.xlu1 %682 }
 0xadc   :  { %v685_v56 = vadd.f32 %v683_v55, %v675_v54 }
 0xade   :  { %1417 = vtanh.f32 %v685_v56 }
 0xaeb   :  { %v1418_v44 = vpop.eup %1417 }
 0xaec   :  { %688 = vrot.lane.b32.xlu0 %v1418_v44, %s1589_s4 }
 0xb5e   :  { %v689_v57 = vpop.permute.xlu0 %688 }
 0xb5f   :  { %v1791_v58 = vmul.f32 %v1416_v51, %v689_v57 }
 0xb61   :  { %698 = vrot.lane.b32.xlu1 %v1791_v58, %s1590_s26 }
 0xbd3   :  { %v699_v59 = vpop.permute.xlu1 %698 }
 0xbd4   :  { %1335 = vmatmul.mubr.msk.f32.vlgmr.msra.gmra.mxu0 %vm189_vm2, %v699_v59 }
 0xbd5   :  { %1349 = vmatpush3.msra.mxu0 %v1664_v7  ;;  %1356 = vmatprep.mubr.msk.f32.mxu0 %vm1588_vm1, %v1587_v6 }
 0xbd6   :  { %1350 = vmatprep.subr.mxu0 %v1587_v6 }
 0xbd7   :  { %1351 = vmatpush3.msra.mxu0 %v1666_v8 }
 0xbd8   :  { %1352 = vmatprep.subr.mxu0 %v1587_v6 }
 0xbd9   :  { %1353 = vmatpush3.msra.mxu0 %v1673_v11 }
 0xbda   :  { %1354 = vmatprep.subr.mxu0 %v1587_v6 }
 0xbdb   :  { %1355 = vmatpush3.msra.mxu0 %v1676_v12 }
 0xc94   :  { %v768_v60 = vpop.f32.mrf.mxu0 }
 0xc95   :  { %v772_v61 = vadd.f32 %v768_v60, %v1721_v46 }
 0xc96   :  { %v1336_v62 = vpop.f32.mrf.mxu0 }
 0xc97   :  { %1419 = vtanh.f32 %v772_v61  ;;  %v1206_v1 = vmul.f32 -1.442695, %v772_v61 }
 0xc99   :  { %1421 = vpow2.f32 %v1206_v1 }
 0xca4   :  { %v1420_v0 = vpop.eup %1419 }
 0xca5   :  { %782 = vrot.lane.b32.xlu0 %v1420_v0, %s1589_s4 }
 0xca6   :  { %v1422_v2 = vpop.eup %1421 }
 0xca7   :  { %v776_v3 = vadd.f32 1.0, %v1422_v2 }
 0xca9   :  { %1423 = vrcp.f32 %v776_v3 }
 0xcb6   :  { %v1424_v4 = vpop.eup %1423 }
 0xcb7   :  { %v780_v10 = vmul.f32 %v1424_v4, %v685_v56 }
 0xd17   :  { %v783_v5 = vpop.permute.xlu0 %782 }
 0xd18   :  { %v785_v9 = vmul.f32 %v1424_v4, %v783_v5 }
 0xd1a   :  { %787 = vrot.lane.b32.xlu1 %v785_v9, %s1590_s26 }
 0xd8c   :  { %v788_v13 = vpop.permute.xlu1 %787 }
 0xd8d   :  { %v790_v14 = vadd.f32 %v788_v13, %v780_v10 }
 0xd8f   :  { %1425 = vtanh.f32 %v790_v14 }
 0xd9c   :  { %v1426_v46 = vpop.eup %1425 }
 0xd9d   :  { %793 = vrot.lane.b32.xlu0 %v1426_v46, %s1589_s4 }
 0xe0f   :  { %v794_v15 = vpop.permute.xlu0 %793 }
 0xe10   :  { %v796_v16 = vmul.f32 %v1424_v4, %v794_v15 }
 0xe12   :  { %803 = vrot.lane.b32.xlu1 %v796_v16, %s1590_s26 }
 0xe84   :  { %v1810_v17 = vpop.permute.xlu1 %803 }
 0xe85   :  { %1346 = vmatmul.mubr.msk.f32.vlgmr.msra.gmra.mxu1 %vm189_vm2, %v1810_v17 }
 0xe86   :  { %1360 = vmatpush3.msra.mxu1 %v1664_v7  ;;  %1367 = vmatprep.mubr.msk.f32.mxu1 %vm1588_vm1, %v1587_v6 }
 0xe87   :  { %1361 = vmatprep.subr.mxu1 %v1587_v6 }
 0xe88   :  { %1362 = vmatpush3.msra.mxu1 %v1666_v8 }
 0xe89   :  { %1363 = vmatprep.subr.mxu1 %v1587_v6 }
 0xe8a   :  { %1364 = vmatpush3.msra.mxu1 %v1673_v11 }
 0xe8b   :  { %1365 = vmatprep.subr.mxu1 %v1587_v6 }
 0xe8c   :  { %1366 = vmatpush3.msra.mxu1 %v1676_v12 }
 0xf45   :  { %v873_v18 = vpop.f32.mrf.mxu1 }
 0xf46   :  { %v877_v19 = vadd.f32 %v873_v18, %v1724_v47 }
 0xf47   :  { %v1347_v21 = vpop.f32.mrf.mxu1 }
 0xf48   :  { %1427 = vtanh.f32 %v877_v19  ;;  %v1208_v22 = vmul.f32 -1.442695, %v877_v19 }
 0xf4a   :  { %1429 = vpow2.f32 %v1208_v22 }
 0xf55   :  { %v1428_v7 = vpop.eup %1427 }
 0xf56   :  { %887 = vrot.lane.b32.xlu0 %v1428_v7, %s1589_s4 }
 0xf57   :  { %v1430_v23 = vpop.eup %1429 }
 0xf58   :  { %v881_v8 = vadd.f32 1.0, %v1430_v23 }
 0xf5a   :  { %1431 = vrcp.f32 %v881_v8 }
 0xf67   :  { %v1432_v24 = vpop.eup %1431 }
 0xf68   :  { %v885_v6 = vmul.f32 %v1432_v24, %v790_v14 }
 0xfc8   :  { %v888_v25 = vpop.permute.xlu0 %887 }
 0xfc9   :  { %v890_v11 = vmul.f32 %v1432_v24, %v888_v25 }
 0xfcb   :  { %892 = vrot.lane.b32.xlu1 %v890_v11, %s1590_s26 }
0x103d   :  { %v893_v12 = vpop.permute.xlu1 %892 }
0x103e   :  { %v895_v26 = vadd.f32 %v893_v12, %v885_v6 }
0x1040   :  { %1433 = vtanh.f32 %v895_v26 }
0x104d   :  { %v1434_v47 = vpop.eup %1433 }
0x104e   :  { %898 = vrot.lane.b32.xlu0 %v1434_v47, %s1589_s4 }
0x10c0   :  { %v899_v27 = vpop.permute.xlu0 %898 }
0x10c1   :  { %v901_v28 = vmul.f32 %v1432_v24, %v899_v27 }
0x10c3   :  { %908 = vrot.lane.b32.xlu1 %v901_v28, %s1590_s26 }
0x1135   :  { %v909_v29 = vpop.permute.xlu1 %908 }
0x1136   :  { %1357 = vmatmul.mubr.msk.f32.vlgmr.msra.gmra.mxu0 %vm189_vm2, %v909_v29 }
0x11f6   :  { %v978_v30 = vpop.f32.mrf.mxu0 }
0x11f7   :  { %v982_v31 = vadd.f32 %v978_v30, %v1727_v48 }
0x11f8   :  { %v1358_v32 = vpop.f32.mrf.mxu0 }
0x11f9   :  { %1435 = vtanh.f32 %v982_v31  ;;  %v1210_v34 = vmul.f32 -1.442695, %v982_v31 }
0x11fb   :  { %1437 = vpow2.f32 %v1210_v34 }
0x1206   :  { %v1436_v33 = vpop.eup %1435 }
0x1207   :  { %992 = vrot.lane.b32.xlu0 %v1436_v33, %s1589_s4 }
0x1208   :  { %v1438_v35 = vpop.eup %1437 }
0x1209   :  { %v986_v36 = vadd.f32 1.0, %v1438_v35 }
0x120b   :  { %1439 = vrcp.f32 %v986_v36 }
0x1218   :  { %v1440_v38 = vpop.eup %1439 }
0x1219   :  { %v990_v41 = vmul.f32 %v1440_v38, %v895_v26 }
0x1279   :  { %v993_v39 = vpop.permute.xlu0 %992 }
0x127a   :  { %v995_v40 = vmul.f32 %v1440_v38, %v993_v39 }
0x127c   :  { %997 = vrot.lane.b32.xlu1 %v995_v40, %s1590_s26 }
0x12ee   :  { %v998_v42 = vpop.permute.xlu1 %997 }
0x12ef   :  { %v1000_v43 = vadd.f32 %v998_v42, %v990_v41 }
0x12f1   :  { %1441 = vtanh.f32 %v1000_v43 }
0x12fe   :  { %v1442_v48 = vpop.eup %1441 }
0x12ff   :  { %1003 = vrot.lane.b32.xlu0 %v1442_v48, %s1589_s4 }
0x1371   :  { %v1004_v45 = vpop.permute.xlu0 %1003 }
0x1372   :  { %v1006_v50 = vmul.f32 %v1440_v38, %v1004_v45 }
0x1374   :  { %1013 = vrot.lane.b32.xlu1 %v1006_v50, %s1590_s26 }
0x13e6   :  { %v1014_v51 = vpop.permute.xlu1 %1013 }
0x13e7   :  { %1368 = vmatmul.mubr.msk.f32.vlgmr.msra.gmra.mxu1 %vm189_vm2, %v1014_v51 }
0x14a7   :  { %v1083_v52 = vpop.f32.mrf.mxu1 }
0x14a8   :  { %v1087_v53 = vadd.f32 %v1083_v52, %v1730_v49 }
0x14a9   :  { %v1369_v54 = vpop.f32.mrf.mxu1 }
0x14aa   :  { %1443 = vtanh.f32 %v1087_v53  ;;  %v1212_v56 = vmul.f32 -1.442695, %v1087_v53 }
0x14ac   :  { %1445 = vpow2.f32 %v1212_v56 }
0x14b7   :  { %v1444_v55 = vpop.eup %1443 }
0x14b8   :  { %1097 = vrot.lane.b32.xlu0 %v1444_v55, %s1589_s4 }
0x14b9   :  { %v1446_v44 = vpop.eup %1445 }
0x14ba   :  { %v1091_v57 = vadd.f32 1.0, %v1446_v44 }
0x14bc   :  { %1447 = vrcp.f32 %v1091_v57 }
0x14c9   :  { %v1448_v59 = vpop.eup %1447 }
0x14ca   :  { %v1095_v49 = vmul.f32 %v1448_v59, %v1000_v43 }
0x152a   :  { %v1098_v60 = vpop.permute.xlu0 %1097 }
0x152b   :  { %v1100_v61 = vmul.f32 %v1448_v59, %v1098_v60 }
0x152d   :  { %1102 = vrot.lane.b32.xlu1 %v1100_v61, %s1590_s26 }
0x1531   :  { %1113 = vrot.lane.b32.xlu1 %v1753_v20, %s1589_s4 }
0x1535   :  { %1116 = vrot.lane.b32.xlu1 %v1772_v37, %s1591_s27 }
0x159f   :  { %v1103_v62 = vpop.permute.xlu1 %1102 }
0x15a0   :  { %v1105_v0 = vadd.f32 %v1103_v62, %v1095_v49 }
0x15a2   :  { %1449 = vtanh.f32 %v1105_v0 }
0x15a3   :  { %v1114_v2 = vpop.permute.xlu1 %1113 }
0x15a4   :  { %v1126_v37 = vsel %vm189_vm2, %v1736_v63, %v1114_v2 }
0x15a7   :  { %v1117_v20 = vpop.permute.xlu1 %1116 }
0x15a8   :  { %v1128_v9 = vsel %vm1127_vm4, %v1126_v37, %v1117_v20 }
0x15a9   :  { %v1130_v46 = vsel %vm1129_vm5, %v1128_v9, %v1791_v58 }
0x15af   :  { %v1450_v1 = vpop.eup %1449 }
0x15b0   :  { %1108 = vrot.lane.b32.xlu0 %v1450_v1, %s1589_s4 }
0x15b4   :  { %1120 = vrot.lane.b32.xlu0 %v901_v28, %s1589_s4 }
0x15b8   :  { %1123 = vrot.lane.b32.xlu0 %v1006_v50, %s1591_s27 }
0x15bc   :  { %1153 = vrot.lane.b32.xlu0 %v1105_v0, %s1591_s27 }
0x1622   :  { %v1109_v3 = vpop.permute.xlu0 %1108 }
0x1623   :  { %v1111_v4 = vmul.f32 %v1448_v59, %v1109_v3 }
0x1625   :  { %1147 = vrot.lane.b32.xlu1 %v1111_v4, %s1590_s26 }
0x1626   :  { %v1121_v5 = vpop.permute.xlu0 %1120 }
0x1627   :  { %v1131_v10 = vsel %vm189_vm2, %v1810_v17, %v1121_v5 }
0x162a   :  { %v1124_v13 = vpop.permute.xlu0 %1123 }
0x162b   :  { %v1132_v14 = vsel %vm1127_vm4, %v1131_v10, %v1124_v13 }
0x162c   :  { %v1133_v15 = vsel %vm1129_vm5, %v1132_v14, %v1111_v4 }
0x162d   :  { %v1136_v16 = vcombine.low %v1130_v46, %v1133_v15 }
0x162e   :  { %v1154_v18 = vpop.permute.xlu0 %1153 }
0x162f   :  { %1213 = vst.sshfl [vmem:[%s1866_s6] sm:$0x33 pattern:$0x76325410] %v1136_v16  ;;  %1156 = vst.msk [vmem:[#allocation11] sm:$0x3] %vm1150_vm6, %v1154_v18 }
0x1630   :  { %1542 = shalt.err (!%p1539_p10)
}
0x1631   :  { %1178 = dma.vmem_to_hbm [thread:$0]  %s1176_s29, 32, %s1868_s8, [#allocation12]  }
0x1632   :  { %s1593_s13 = smov [#allocation10]  }
0x1633   :  { %s1165_s14 = sshll.u32 %s1593_s13, 4  ;;  %s1166_s14 = int_to_ptr.vmem [resolvable:$true] %s1165_s14 }
0x1634   :  { %s1551_s6 = scalar_lea.vmem %s1166_s14, 32  ;;  %p1556_p12 = scmp.lt.s32.totalorder %s1166_s14, %s1166_s14 }
0x1635   :  { %p1552_p11 = scmp.ne.s32.totalorder %s1166_s14, %s1551_s6  ;;  %p1557_p13 = scmp.lt.s32.totalorder %s1551_s6, %s1551_s6 }
0x1637   :  { %p1558_p0 = por %p1557_p13, %p1556_p12 }
0x1639   :  { %p1559_p1 = pnand %p1558_p0, %p1552_p11 }
0x1697   :  { %v1148_v63 = vpop.permute.xlu1 %1147 }
0x1698   :  { %1151 = vst.msk [vmem:[#allocation10] sm:$0x3] %vm1150_vm6, %v1148_v63 }
0x1699   :  { %1562 = shalt.err (!%p1559_p1)
}
0x169a   :  { %1168 = dma.vmem_to_hbm [thread:$0]  %s1166_s14, 32, %s1867_s7, [#allocation4]  }
0x169b   :  { %1577 = dma.done.wait [#allocation4], 32  }
0x169c   :  { %1578 = vsyncadd [#allocation4], 4294967264 }
0x169d   :  { %1579 = dma.done.wait [#allocation12], 32  }
0x169e   :  { %1580 = vsyncadd [#allocation12], 4294967264 }
0x169f   :  { %1187 = vsyncpa [#allocation3], 1 }
0x16a0   :  { %1188 = vsyncpa [#allocation6], 1 }
0x16a1   :  { %1189 = vsyncpa [#allocation9], 1 }
0x16a2   :  { %1190 = vsyncpa [#allocation4], 1 }
0x16a3   :  { %1191 = vsyncpa [#allocation12], 1 }

</bundles_post_ra>
